<compile_context>
chip_gen: v7x
topology: tpu7x:2x2x1
jax: 0.10.0
libtpu: 0.0.40
codegen_flags: <defaults>
</compile_context>

<pallas_src>
import jax
import jax.numpy as jnp
import numpy as np
from jax.experimental import pallas as pl
from jax.experimental.pallas import tpu as pltpu


def _outconv_kernel(x_ref, w_ref, b_ref, o_ref):
    """1x1 conv + bias on one (batch, spatial-tile) block.

    x_ref : (Cin, TILE_HW)   activations, channels on sublanes, HW on lanes
    w_ref : (Cout, Cin)      1x1 conv weight
    b_ref : (Cout, 1)        bias
    o_ref : (Cout, TILE_HW)  output block
    """
    acc = jnp.dot(w_ref[...], x_ref[...],
                  preferred_element_type=jnp.float32,
                  precision=jax.lax.Precision.HIGHEST)       # (Cout, TILE_HW)
    o_ref[...] = acc + b_ref[...]                            # lane-dense store


def _pick_tile_hw(hw, cin, cout):
    """Largest 128-multiple power-of-two tile dividing HW, VMEM-budgeted."""
    if hw % 128 != 0:
        return hw  # full extent — always a legal block shape
    tile = 128
    budget = 8 * 1024 * 1024  # bytes for double-buffered in+out tile pair
    while (hw % (tile * 2) == 0
           and (tile * 2) * 4 * (cin + cout) * 2 <= budget):
        tile *= 2
    return tile


def outconv_forward(x_nchw, w_oihw, bias):
    """OutConv.forward(x): 1x1 Conv2d with bias. NCHW in, NCHW out."""
    B, Cin, H, W = x_nchw.shape
    Cout = w_oihw.shape[0]
    HW = H * W
    tile_hw = _pick_tile_hw(HW, Cin, Cout)
    n_tiles = HW // tile_hw

    x2 = x_nchw.reshape(B, Cin, HW).astype(jnp.float32)      # pure reshape
    w2 = w_oihw.reshape(Cout, Cin).astype(jnp.float32)
    b2 = bias.reshape(Cout, 1).astype(jnp.float32)

    cost = pl.CostEstimate(
        flops=2 * B * Cout * Cin * HW,
        transcendentals=0,
        bytes_accessed=4 * (B * Cin * HW + B * Cout * HW + Cout * Cin + Cout),
    )

    y = pl.pallas_call(
        _outconv_kernel,
        out_shape=jax.ShapeDtypeStruct((B, Cout, HW), jnp.float32),
        grid_spec=pltpu.PrefetchScalarGridSpec(
            num_scalar_prefetch=0,
            grid=(B, n_tiles),
            in_specs=[
                pl.BlockSpec((pl.Squeezed(), Cin, tile_hw),
                             lambda b, t: (b, 0, t)),
                pl.BlockSpec((Cout, Cin), lambda b, t: (0, 0)),
                pl.BlockSpec((Cout, 1), lambda b, t: (0, 0)),
            ],
            out_specs=pl.BlockSpec((pl.Squeezed(), Cout, tile_hw),
                                   lambda b, t: (b, 0, t)),
        ),
        compiler_params=pltpu.CompilerParams(
            dimension_semantics=("parallel", "parallel"),
            vmem_limit_bytes=64 << 20),
        cost_estimate=cost,
    )(x2, w2, b2)

    return y.reshape(B, Cout, H, W)


def _reference(x_nchw, w_oihw, bias):
    """Pure-JAX reference (XLA conv) for correctness checking."""
    y = jax.lax.conv_general_dilated(
        x_nchw, w_oihw, (1, 1), 'VALID',
        dimension_numbers=('NCHW', 'OIHW', 'NCHW'),
        precision=jax.lax.Precision.HIGHEST)
    return y + bias[None, :, None, None]


if __name__ == "__main__":
    key = jax.random.PRNGKey(0)
    kx, kw, kb = jax.random.split(key, 3)

    # OutConv(in_channels=8, out_channels=4) on a small feature map.
    B, Cin, Cout, H, W = 2, 8, 4, 16, 16
    x = jax.random.normal(kx, (B, Cin, H, W), jnp.float32)
    w = jax.random.normal(kw, (Cout, Cin, 1, 1), jnp.float32) * 0.1
    b = jax.random.normal(kb, (Cout,), jnp.float32) * 0.1

    out = jax.jit(outconv_forward)(x, w, b)
    out = jax.block_until_ready(out)

    assert out.shape == (B, Cout, H, W), out.shape
    ref = _reference(x, w, b)
    np.testing.assert_allclose(np.asarray(out), np.asarray(ref),
                               rtol=1e-4, atol=1e-4)
    print("KERNEL_OK")
</pallas_src>

<mosaic_0001>
module attributes {stable_mosaic.version = 11 : i64} {
  func.func @_outconv_kernel(%arg0: i32, %arg1: i32, %arg2: memref<1x8x256xf32, #tpu.memory_space<vmem>>, %arg3: memref<4x8xf32, #tpu.memory_space<vmem>>, %arg4: memref<4x1xf32, #tpu.memory_space<vmem>>, %arg5: memref<1x4x256xf32, #tpu.memory_space<vmem>>) attributes {dimension_semantics = [#tpu.dimension_semantics<parallel>, #tpu.dimension_semantics<parallel>], iteration_bounds = array<i64: 2, 1>, scalar_prefetch = 0 : i64, scratch_operands = 0 : i64, tpu.core_type = #tpu.core_type<tc>, window_params = [{transform_indices = @transform_0, window_bounds = array<i64: 1, 8, 256>}, {pipeline_mode = #tpu.pipeline_mode<synchronous>, transform_indices = @transform_1, window_bounds = array<i64: 4, 8>}, {pipeline_mode = #tpu.pipeline_mode<synchronous>, transform_indices = @transform_2, window_bounds = array<i64: 4, 1>}, {transform_indices = @transform_3, window_bounds = array<i64: 1, 4, 256>}]} {
    %c0 = arith.constant 0 : index
    %c0_0 = arith.constant 0 : index
    %0 = vector.load %arg3[%c0, %c0_0] : memref<4x8xf32, #tpu.memory_space<vmem>>, vector<4x8xf32>
    %c0_1 = arith.constant 0 : index
    %c0_2 = arith.constant 0 : index
    %c0_3 = arith.constant 0 : index
    %1 = vector.load %arg2[%c0_1, %c0_2, %c0_3] : memref<1x8x256xf32, #tpu.memory_space<vmem>>, vector<1x8x256xf32>
    %2 = vector.shape_cast %1 : vector<1x8x256xf32> to vector<8x256xf32>
    %cst = arith.constant dense<0.000000e+00> : vector<4x256xf32>
    %3 = tpu.matmul %0, %2, %cst {dimension_numbers = #tpu.dot_dimension_numbers<[1], [0], [0], [1], [0, 0, 1, 1], [], []>, precision = #tpu.contract_precision<fp32>} : vector<4x8xf32>, vector<8x256xf32>, vector<4x256xf32> -> vector<4x256xf32>
    %c0_4 = arith.constant 0 : index
    %c0_5 = arith.constant 0 : index
    %4 = vector.load %arg4[%c0_4, %c0_5] : memref<4x1xf32, #tpu.memory_space<vmem>>, vector<4x1xf32>
    %5 = vector.broadcast %4 : vector<4x1xf32> to vector<4x256xf32>
    %6 = arith.addf %3, %5 : vector<4x256xf32>
    %c0_6 = arith.constant 0 : index
    %c0_7 = arith.constant 0 : index
    %c0_8 = arith.constant 0 : index
    %7 = vector.load %arg5[%c0_6, %c0_7, %c0_8] : memref<1x4x256xf32, #tpu.memory_space<vmem>>, vector<1x4x256xf32>
    %8 = vector.shape_cast %7 : vector<1x4x256xf32> to vector<4x256xf32>
    %9 = vector.shape_cast %6 : vector<4x256xf32> to vector<1x4x256xf32>
    tpu.vector_store %arg5[%c0_6, %c0_7, %c0_8], %9 {strides = array<i32>} : memref<1x4x256xf32, #tpu.memory_space<vmem>>, vector<1x4x256xf32>,
    return
  }
  func.func @transform_0(%arg0: i32, %arg1: i32) -> (i32, i32, i32) {
    %c0_i32 = arith.constant 0 : i32
    %c0_i32_0 = arith.constant 0 : i32
    return %arg0, %c0_i32, %arg1 : i32, i32, i32
  }
  func.func @transform_1(%arg0: i32, %arg1: i32) -> (i32, i32) {
    %c0_i32 = arith.constant 0 : i32
    %c0_i32_0 = arith.constant 0 : i32
    %c0_i32_1 = arith.constant 0 : i32
    return %c0_i32, %c0_i32_0 : i32, i32
  }
  func.func @transform_2(%arg0: i32, %arg1: i32) -> (i32, i32) {
    %c0_i32 = arith.constant 0 : i32
    %c0_i32_0 = arith.constant 0 : i32
    %c0_i32_1 = arith.constant 0 : i32
    return %c0_i32, %c0_i32_0 : i32, i32
  }
  func.func @transform_3(%arg0: i32, %arg1: i32) -> (i32, i32, i32) {
    %c0_i32 = arith.constant 0 : i32
    %c0_i32_0 = arith.constant 0 : i32
    return %arg0, %c0_i32, %arg1 : i32, i32, i32
  }
}

</mosaic_0001>

<bundles_post_ra>
// kernel: outconv_forward.1
= control target key start
LH: loop header
LB: loop body
LE: loop exit
PB: predicated region body
PF: predicated region fallthrough
CT: control target
= control target key end

     0   :  { %8 = vsyncpa [#allocation3], 0  ;;  %s1398_s0 = inlined_call_operand.hbm [shape: f32[2,8,256], index: 0, kind: input, shape index: {}]   ;;  %s1399_s1 = inlined_call_operand.hbm [shape: f32[4,8], index: 1, kind: input, shape index: {}]   ;;  %s1400_s2 = inlined_call_operand.hbm [shape: f32[4,1], index: 2, kind: input, shape index: {}]   ;;  %s1401_s3 = inlined_call_operand.hbm [shape: f32[2,4,256], index: 3, kind: output, shape index: {}]  }
   0x1   :  { %10 = vsyncpa [#allocation3 + $0x1], 0 }
   0x2   :  { %11 = vsyncpa [#allocation6], 0 }
   0x3   :  { %12 = vsyncpa [#allocation4], 0 }
   0x4   :  { %14 = vsyncpa [#allocation4 + $0x1], 0  ;;  %s1154_s12 = smov 0   ;;  %s1156_s13 = smov 0  }
   0x5   :  { %s1158_s14 = smov 0   ;;  %s1160_s15 = smov 0  }
   0x6   :  { %s1162_s16 = smov 0   ;;  %s1164_s17 = smov 0  }
   0x7 LB: > { %s835_s18 = sadd.s32 4294967295, %s1126_s17   ;;  %s836_s19 = sadd.s32 4294967294, %s1126_s17   ;;  %s1126_s17 = sphi %s1164_s17, %s20_s17   ;;  %s1122_s16 = sphi %s1162_s16, %s1424_s16   ;;  %s1118_s15 = sphi %s1160_s15, %s1423_s15   ;;  %s1114_s14 = sphi %s1158_s14, %s1422_s14   ;;  %s1110_s13 = sphi %s1156_s13, %s1421_s13   ;;  %s1106_s12 = sphi %s1154_s12, %s1420_s12  }
   0x8   : > { %p54_p0 = scmp.ne.s32.totalorder %s1110_s13, %s1106_s12  ;;  %p1188_p1 = scmp.eq.s32.totalorder %s835_s18, 0 }
   0x9   : > { %p1192_p2 = scmp.eq.s32.totalorder %s835_s18, 1  ;;  %p128_p3 = scmp.eq.s32.totalorder %s836_s19, 1 }
   0xa   : > { %s1406_s20 = scalar_select %p1188_p1, 1, 0 }
   0xb   : > { %s1407_s21 = scalar_select %p1192_p2, 1, 0 }
   0xc   : > { %p1198_p4 = por %p1188_p1, %p54_p0  ;;  %p837_p5 = scmp.ge.s32.totalorder %s1126_s17, 1 }
   0xd   : > { %p1203_p6 = por %p128_p3, %p54_p0  ;;  %p135_p7 = scmp.lt.s32.totalorder %s1126_s17, 3 }
   0xe   : > { %s1408_s22 = scalar_select %p1198_p4, 1, 0 }
   0xf   : > { %s1409_s23 = scalar_select %p1203_p6, 1, 0 }
  0x10   : > { %p1208_p8 = pnand %p837_p5, %p135_p7  ;;  %s1128_s25 = smov [#allocation5]  }
  0x11   : > { %s148_s26 = sshll.u32 %s1128_s25, 4  ;;  %s1129_s27 = smov [#allocation7]   ;;  %s149_s26 = int_to_ptr.vmem [resolvable:$true] %s148_s26 }
  0x12   : > { %s1410_s24 = scalar_select %p1208_p8, 1, 0 }
  0x13   : > { %p880_p10 = pneg %p1208_p8  ;;  %s159_s28 = sshll.u32 %s1129_s27, 4  ;;  %s1221_s28 = int_to_ptr.vmem [resolvable:$true] %s159_s28 }
  0x14   : > { %s954_s5 = scalar_lea.hbm %s1399_s1, 64 }
  0x15   : > { %p1217_p11 = pnand %p880_p10, %p1188_p1  ;;  %p955_p12 = scmp.ne.s32.totalorder %s1399_s1, %s954_s5 }
  0x16   : > { %p961_p5 = scmp.lt.u32.totalorder %s954_s5, %s1399_s1 }
  0x17   : > { %p956_p13 = pneg %p1217_p11 }
  0x19   : > { %p957_p0 = pnand %p956_p13, %p955_p12 }
  0x1b   : > { %p958_p3 = pneg %p957_p0 }
  0x1d   : > { %p963_p7 = pnand %p961_p5, %p958_p3 }
  0x1f   : > { %966 = shalt.err (!%p963_p7)
}
  0x20   : > { %s967_s10 = scalar_lea.vmem %s149_s26, 64  ;;  %p975_p1 = scmp.lt.s32.totalorder %s149_s26, %s149_s26 }
  0x21   : > { %p968_p10 = scmp.ne.s32.totalorder %s149_s26, %s967_s10  ;;  %p976_p4 = scmp.lt.s32.totalorder %s967_s10, %s967_s10 }
  0x23   : > { %p970_p9 = pnand %p968_p10, %p956_p13  ;;  %p977_p8 = por %p976_p4, %p975_p1 }
  0x25   : > { %p971_p6 = pneg %p970_p9 }
  0x27   : > { %p978_p2 = pnand %p977_p8, %p971_p6 }
  0x29   : > { %981 = shalt.err (!%p978_p2)
}
  0x2a   : > { %883 = dma.hbm_to_vmem [thread:$0]  (!%p1217_p11), %s1399_s1, 64, %s149_s26, [#allocation6]  }
  0x2b   : > { %s982_s27 = scalar_lea.hbm %s1400_s2, 64 }
  0x2c   : > { %p983_p9 = scmp.ne.s32.totalorder %s1400_s2, %s982_s27  ;;  %p989_p2 = scmp.lt.u32.totalorder %s982_s27, %s1400_s2 }
  0x2e   : > { %p985_p1 = pnand %p983_p9, %p956_p13 }
  0x30   : > { %p986_p4 = pneg %p985_p1 }
  0x32   : > { %p991_p6 = pnand %p989_p2, %p986_p4 }
  0x34   : > { %994 = shalt.err (!%p991_p6)
}
  0x35   : > { %s995_s26 = scalar_lea.vmem %s1221_s28, 64  ;;  %p1003_p3 = scmp.lt.s32.totalorder %s1221_s28, %s1221_s28 }
  0x36   : > { %p996_p8 = scmp.ne.s32.totalorder %s1221_s28, %s995_s26  ;;  %p1004_p5 = scmp.lt.s32.totalorder %s995_s26, %s995_s26 }
  0x38   : > { %p998_p12 = pnand %p996_p8, %p956_p13  ;;  %p1005_p7 = por %p1004_p5, %p1003_p3 }
  0x3a   : > { %p999_p0 = pneg %p998_p12 }
  0x3c   : > { %p1006_p10 = pnand %p1005_p7, %p999_p0 }
  0x3e   : > { %1009 = shalt.err (!%p1006_p10)
}
  0x3f   : > { %886 = dma.hbm_to_vmem [thread:$0]  (!%p1217_p11), %s1400_s2, 64, %s1221_s28, [#allocation6]  }
  0x40   : > { %s32_s9 = sadd.s32 1, %s1122_s16  ;;  %s41_s10 = sadd.s32 1, %s1114_s14 }
  0x41   : > { %p34_p13 = scmp.ge.s32.totalorder %s32_s9, 2  ;;  %p48_p9 = scmp.ne.s32.totalorder %s1114_s14, %s1110_s13 }
  0x42   : > { %p49_p1 = scmp.eq.s32.totalorder %s1126_s17, 0  ;;  %p897_p4 = scmp.lt.s32.totalorder %s1126_s17, 2 }
  0x43   : > { %s1426_s9 = smov (%p34_p13, %s32_s9), 0  ;;  %p1412_p6 = scmp.ne.s32.totalorder %s1407_s21, 0 }
  0x44   : > { %p50_p2 = por %p49_p1, %p48_p9  ;;  %s36_s11 = ssub.s32 %s1122_s16, %s1426_s9 }
  0x45   : > { %p1280_p8 = por %p1412_p6, %p48_p9  ;;  %s170_s18 = sand.u32 1, %s1114_s14  }
  0x46   : > { %p39_p12 = scmp.eq.s32.totalorder %s36_s11, 0  ;;  %s841_s28 = sshll.u32 %s170_s18, 4 }
  0x47   : > { %s854_s19 = sshll.u32 %s1122_s16, 8  ;;  %s174_s21 = scalar_lea.vmem [#allocation2], %s841_s28 }
  0x48   : > { %s1289_s25 = scalar_select %p39_p12, %s1114_s14, %s41_s10  }
  0x49   : > { %s1294_s4 = scalar_lea.hbm %s1398_s0, %s854_s19  ;;  %s184_s5 = sshll.u32 %s174_s21, 4  ;;  %s1302_s5 = int_to_ptr.vmem [resolvable:$true] %s184_s5 }
  0x4a   : > { %p1298_p11 = pnand %p897_p4, %p50_p2  ;;  %s171_s26 = scalar_lea.sflag [#allocation3], %s170_s18 }
  0x4b   : > { %s1010_s7 = scalar_lea.hbm %s1294_s4, 256  ;;  %s1015_s11 = scalar_lea.hbm %s1398_s0, 512 }
  0x4c   : > { %p1011_p0 = scmp.ne.s32.totalorder %s1294_s4, %s1010_s7  ;;  %p1012_p3 = pneg %p1298_p11 }
  0x4d   : > { %p1016_p10 = scmp.lt.u32.totalorder %s1294_s4, %s1398_s0  ;;  %p1017_p13 = scmp.lt.u32.totalorder %s1015_s11, %s1010_s7 }
  0x4e   : > { %p1013_p5 = pnand %p1012_p3, %p1011_p0  ;;  %p1019_p1 = scmp.lt.u32.totalorder %s1010_s7, %s1294_s4 }
  0x4f   : > { %p1018_p9 = por %p1017_p13, %p1016_p10 }
  0x50   : > { %p1014_p7 = pneg %p1013_p5 }
  0x51   : > { %p1020_p4 = por %p1019_p1, %p1018_p9 }
  0x53   : > { %p1021_p2 = pnand %p1020_p4, %p1014_p7 }
  0x55   : > { %1024 = shalt.err (!%p1021_p2)
}
  0x56   : > { %s1025_s18 = scalar_lea.vmem %s1302_s5, 256  ;;  %s1130_s27 = smov [#allocation2]  }
  0x57   : > { %p1026_p6 = scmp.ne.s32.totalorder %s1302_s5, %s1025_s18  ;;  %s1030_s30 = sshll.u32 %s1130_s27, 4  ;;  %s1031_s30 = int_to_ptr.vmem [resolvable:$false] %s1030_s30 }
  0x58   : > { %s1032_s21 = scalar_lea.vmem %s1031_s30, 512  ;;  %p1033_p5 = scmp.lt.s32.totalorder %s1302_s5, %s1031_s30 }
  0x59   : > { %p1028_p12 = pnand %p1026_p6, %p1012_p3  ;;  %p1034_p10 = scmp.lt.s32.totalorder %s1032_s21, %s1025_s18 }
  0x5b   : > { %p1029_p0 = pneg %p1028_p12  ;;  %p1035_p13 = por %p1034_p10, %p1033_p5 }
  0x5d   : > { %p1036_p9 = pnand %p1035_p13, %p1029_p0 }
  0x5f   : > { %1039 = shalt.err (!%p1036_p9)
}
  0x60   : > { %890 = dma.hbm_to_vmem [thread:$0]  (!%p1298_p11), %s1294_s4, 256, %s1302_s5, %s171_s26  }
  0x61   : > { %p1415_p7 = scmp.ne.s32.totalorder %s1410_s24, 0 }
  0x62   : > { %s1332_s7 = sand.u32 (!%p1415_p7), 1, %s1110_s13   ;;  %p1416_p3 = scmp.ne.s32.totalorder (!%p1415_p7), %s1408_s22, 0 }
  0x63   : > { %193 = sbr.rel (%p1415_p7) target bundleno = 373 (0x175), region = 32  ;;  %s845_s8 = sshll.u32 (!%p1415_p7), %s1332_s7, 4 }
  0x64   : > { %s196_s10 = scalar_lea.sflag (!%p1415_p7), [#allocation3], %s1332_s7  ;;  %s199_s11 = scalar_lea.vmem (!%p1415_p7), [#allocation2], %s845_s8 }
  0x6a   : > { %1093 = dma.done.wait (%p1416_p3), %s196_s10, 256  }
  0x6b   : > { %1095 = vsyncadd (%p1416_p3), %s196_s10, 4294967040  ;;  %p1417_p1 = scmp.ne.s32.totalorder %s1406_s20, 0 }
  0x6d   : > { %1097 = dma.done.wait (%p1417_p1), [#allocation6], 128  }
  0x6e   : > { %1099 = vsyncadd (%p1417_p1), [#allocation6], 4294967168  ;;  %v1131_v0 = vmov 0.0   ;;  %v1132_v1 = vmov 0   ;;  %vm241_vm0 = vcmask 64512   ;;  %v234_v2 = vld [vmem:[%s199_s11 + $0x8] sm:$0xff] }
  0x6f   : > { %548 = vmatprep.mubr.f32.mxu0 %v1131_v0  ;;  %311 = vmatprep.mubr.f32.mxu1 %v1131_v0  ;;  %v233_v3 = vld [vmem:[%s199_s11] sm:$0xff]  ;;  %v245_v5 = vand.u32 4294901760, %v234_v2  ;;  %s848_s20 = sshll.u32 %s1332_s7, 3  ;;  %s855_s22 = sshll.u32 %s1118_s15, 7 }
  0x70   : > { %953 = vset.pattern.permute.xlu0 %v1132_v1  ;;  %v232_v4 = vld [vmem:[#allocation5] sm:$0xf]  ;;  %v247_v6 = vand.u32 4294901760, %v233_v3  ;;  %v235_v8 = vld [vmem:[#allocation7] sm:$0xf]  ;;  %s229_s24 = scalar_lea.vmem [#allocation8], %s848_s20  ;;  %s1349_s26 = scalar_lea.hbm %s1401_s3, %s855_s22 }
  0x71   : > { %v243_v7 = vsel %vm241_vm0, %v232_v4, 0  ;;  %238 = vperm.xlu0 %953, %v235_v8   ;;  %483 = vmatprep.subr.mxu0 %v245_v5  ;;  %v324_v11 = vsub.f32 %v234_v2, %v245_v5  ;;  %s732_s4 = sshll.u32 %s229_s24, 4  ;;  %s716_s28 = scalar_lea.sflag [#allocation4], %s1332_s7  ;;  %s1351_s4 = int_to_ptr.vmem [resolvable:$true] %s732_s4 }
  0x72   : > { %v312_v9 = vand.u32 4294901760, %v243_v7  ;;  %v330_v10 = vsub.f32 %v233_v3, %v247_v6  ;;  %246 = vmatprep.subr.mxu1 %v245_v5  ;;  %485 = vmatpush1.msra.mxu0 %v247_v6  ;;  %s1040_s19 = scalar_lea.vmem %s1351_s4, 128  ;;  %s1133_s15 = smov [#allocation8]  }
  0x73   : > { %248 = vmatpush1.msra.mxu1 %v247_v6  ;;  %v325_v13 = vand.u32 4294901760, %v324_v11  ;;  %p1041_p11 = scmp.ne.s32.totalorder %s1351_s4, %s1040_s19  ;;  %s1044_s18 = sshll.u32 %s1133_s15, 4  ;;  %s1045_s18 = int_to_ptr.vmem [resolvable:$false] %s1044_s18 }
  0x74   : > { %v313_v12 = vsub.f32 %v243_v7, %v312_v9  ;;  %v331_v14 = vand.u32 4294901760, %v330_v10  ;;  %s1046_s27 = scalar_lea.vmem %s1045_s18, 256  ;;  %p1047_p6 = scmp.lt.s32.totalorder %s1351_s4, %s1045_s18 }
  0x75   : > { %v326_v16 = vsub.f32 %v324_v11, %v325_v13  ;;  %561 = vmatprep.subr.mxu0 %v325_v13  ;;  %p1042_p4 = pnand %p1041_p11, %p1280_p8  ;;  %p1048_p12 = scmp.lt.s32.totalorder %s1046_s27, %s1040_s19 }
  0x76   : > { %v314_v15 = vand.u32 4294901760, %v313_v12  ;;  %v332_v17 = vsub.f32 %v330_v10, %v331_v14 }
  0x77   : > { %v327_v19 = vand.u32 4294901760, %v326_v16  ;;  %p1043_p2 = pneg %p1042_p4  ;;  %p1049_p0 = por %p1048_p12, %p1047_p6 }
  0x78   : > { %552 = vmatmul.mubr.f32.vlgmr.msra.gmra.mrb[0].mxu0 %v314_v15  ;;  %v315_v18 = vsub.f32 %v313_v12, %v314_v15  ;;  %v333_v20 = vand.u32 4294901760, %v332_v17 }
  0x79   : > { %565 = vmatpush1.msra.mxu0 %v331_v14  ;;  %628 = vmatprep.mubr.f32.mxu0 %v1131_v0  ;;  %p1050_p5 = pnand %p1049_p0, %p1043_p2 }
  0x7a   : > { %v316_v21 = vand.u32 4294901760, %v315_v18  ;;  %637 = vmatprep.subr.mxu0 %v245_v5  ;;  %328 = vmatprep.subr.mxu1 %v327_v19 }
  0x7c   : > { %317 = vmatmul.mubr.f32.vlgmr.msra.gmra.mrb[0].mxu1 %v316_v21 }
  0x7d   : > { %334 = vmatpush1.msra.mxu1 %v333_v20  ;;  %397 = vmatprep.mubr.f32.mxu1 %v1131_v0 }
  0x7e   : > { %407 = vmatprep.subr.mxu1 %v324_v11 }
  0x80   : > { %630 = vmatmul.mubr.f32.vlgmr.msra.gmra.mrb[0].mxu0 %v312_v9 }
  0x81   : > { %639 = vmatpush1.msra.mxu0 %v247_v6  ;;  %702 = vmatprep.mubr.f32.mxu0 %v1131_v0 }
  0x84   : > { %399 = vmatmul.mubr.f32.vlgmr.msra.gmra.mrb[0].mxu1 %v312_v9 }
  0x85   : > { %410 = vmatpush1.msra.mxu1 %v330_v10  ;;  %473 = vmatprep.mubr.f32.mxu1 %v1131_v0 }
  0x88   : > { %704 = vmatmul.mubr.f32.vlgmr.msra.gmra.mrb[0].mxu0 %v312_v9 }
  0x8c   : > { %476 = vmatmul.mubr.f32.vlgmr.msra.gmra.mrb[0].mxu1 %v313_v12 }
  0xf0   : > { %v239_v24 = vpop.permute.xlu0 %238 }
 0x15b   : > { %v705_v22 = vpop.f32.mrb[0].mxu0 }
 0x15c   : > { %v707_v23 = vpop.f32.mrb[1].mxu0 }
 0x15f   : > { %v477_v25 = vpop.f32.mrb[0].mxu1 }
 0x160   : > { %v856_v26 = vadd.f32 %v477_v25, %v239_v24  ;;  %v479_v27 = vpop.f32.mrb[1].mxu1 }
 0x161   : > { %v858_v28 = vadd.f32 %v479_v27, %v239_v24 }
 0x162   : > { %v857_v29 = vadd.f32 %v856_v26, %v705_v22 }
 0x163   : > { %v859_v30 = vadd.f32 %v858_v28, %v707_v23 }
 0x165   : > { %v712_v31 = vcombine.low %v857_v29, %v859_v30 }
 0x167   : > { %714 = vst [vmem:[%s229_s24] sm:$0xff] %v712_v31 }
 0x168   : > { %1053 = shalt.err (!%p1050_p5)
}
 0x169   : > { %s1054_s30 = scalar_lea.hbm %s1349_s26, 128  ;;  %s1058_s8 = scalar_lea.hbm %s1401_s3, 256 }
 0x16a   : > { %p1055_p10 = scmp.ne.s32.totalorder %s1349_s26, %s1054_s30  ;;  %p1059_p7 = scmp.lt.u32.totalorder %s1349_s26, %s1401_s3 }
 0x16b   : > { %p1060_p3 = scmp.lt.u32.totalorder %s1058_s8, %s1054_s30  ;;  %p1062_p11 = scmp.lt.u32.totalorder %s1054_s30, %s1349_s26 }
 0x16c   : > { %p1056_p13 = pnand %p1055_p10, %p1280_p8 }
 0x16d   : > { %p1061_p1 = por %p1060_p3, %p1059_p7 }
 0x16e   : > { %p1057_p9 = pneg %p1056_p13 }
 0x16f   : > { %p1063_p4 = por %p1062_p11, %p1061_p1 }
 0x171   : > { %p1064_p2 = pnand %p1063_p4, %p1057_p9 }
 0x173   : > { %1067 = shalt.err (!%p1064_p2)
}
 0x174   : > { %878 = dma.vmem_to_hbm [thread:$0]  (%p1280_p8), %s1351_s4, 128, %s1349_s26, %s716_s28  }
 0x175 PF: > { %s744_s20 = sand.u32 1, %s1106_s12   ;;  %p1418_p6 = scmp.ne.s32.totalorder %s1409_s23, 0 }
 0x176   : > { %p1419_p12 = scmp.ge.s32.totalorder %s1126_s17, 2  ;;  %s745_s22 = scalar_lea.sflag [#allocation4], %s744_s20 }
 0x178   : > { %p892_p0 = pnand %p1419_p12, %p1418_p6 }
 0x17a   : > { %1101 = dma.done.wait (!%p892_p0), %s745_s22, 128  }
 0x17b   : > { %1103 = vsyncadd (!%p892_p0), %s745_s22, 4294967168  ;;  %s20_s17 = sadd.s32 1, %s1126_s17   ;;  %s1420_s12 = smov %s1110_s13 }
 0x17c   : > { %p17_p5 = scmp.ge.s32.totalorder %s20_s17, 4   ;;  %s1421_s13 = smov %s1114_s14 }
 0x17d   : > { %s1422_s14 = smov %s1289_s25  ;;  %s1423_s15 = smov %s1122_s16 }
 0x17e   : > { %s1424_s16 = smov %s1426_s9  ;;  %19 = sbr.rel (!%p17_p5) target bundleno = 7 (0x7), region = 85 }
 0x185   :  { %750 = vsyncpa [#allocation3], 1 }
 0x186   :  { %752 = vsyncpa [#allocation3 + $0x1], 1 }
 0x187   :  { %753 = vsyncpa [#allocation6], 1 }
 0x188   :  { %754 = vsyncpa [#allocation4], 1 }
 0x189   :  { %756 = vsyncpa [#allocation4 + $0x1], 1 }

</bundles_post_ra>
